<compile_context>
chip_gen: v7x
topology: tpu7x:2x2x1
jax: 0.10.0
libtpu: 0.0.40
codegen_flags: <defaults>
</compile_context>

<pallas_src>
import functools

import jax
import jax.numpy as jnp
from jax.experimental import pallas as pl
from jax.experimental.pallas import tpu as pltpu

KERNEL_SIZE = 7
PAD = (KERNEL_SIZE - 1) // 2


def _conv_sigmoid(w_ref, avg, mx):
    """Conv1d(2->1, K=7, zero pad 3, no bias) on pooled (Bt, L) f32 features,
    followed by sigmoid. Taps are scalar reads from SMEM; shifts go to the XLU."""
    Bt, L = avg.shape
    lane = jax.lax.broadcasted_iota(jnp.int32, (Bt, L), 1)
    out = jnp.zeros((Bt, L), jnp.float32)
    for k in range(KERNEL_SIZE):
        d = k - PAD
        w_avg = w_ref[k]                 # tap for the avg-pool channel
        w_max = w_ref[KERNEL_SIZE + k]   # tap for the max-pool channel
        if d == 0:
            out = out + w_avg * avg + w_max * mx
        else:
            shift = (-d) % L             # rolled[l] = feat[(l + d) mod L]
            a_s = pltpu.roll(avg, shift=shift, axis=1)   # positive axis (Mosaic requirement)
            m_s = pltpu.roll(mx, shift=shift, axis=1)
            contrib = w_avg * a_s + w_max * m_s
            valid = (lane < (L - d)) if d > 0 else (lane >= (-d))
            out = out + jnp.where(valid, contrib, 0.0)
    return jax.nn.sigmoid(out)


def _flat_kernel(w_ref, x_ref, o_ref, *, C, L):
    """x_ref/o_ref: (Bt, C*L) blocks — batch rows on sublanes, channels on lanes."""
    x0 = x_ref[:, pl.ds(0, L)]
    acc = x0.astype(jnp.float32)         # f32 accumulation for the mean
    mx = x0                              # max stays in the input dtype
    for c in range(1, C):
        xc = x_ref[:, pl.ds(c * L, L)]
        acc = acc + xc.astype(jnp.float32)
        mx = jnp.maximum(mx, xc)
    avg = acc * jnp.float32(1.0 / C)
    attn = _conv_sigmoid(w_ref, avg, mx.astype(jnp.float32)).astype(o_ref.dtype)
    for c in range(C):                   # scale each channel slice in input dtype
        o_ref[:, pl.ds(c * L, L)] = x_ref[:, pl.ds(c * L, L)] * attn


def _nc_kernel(w_ref, x_ref, o_ref):
    """x_ref/o_ref: (Bt, C, L) blocks — no whole-block f32 materialization."""
    x = x_ref[...]
    avg = jnp.mean(x, axis=1, dtype=jnp.float32)        # (Bt, L), f32 accumulation
    mx = jnp.max(x, axis=1).astype(jnp.float32)         # (Bt, L)
    attn = _conv_sigmoid(w_ref, avg, mx).astype(o_ref.dtype)
    o_ref[...] = x * attn[:, None, :]                   # scale stays in input dtype


def _vmem_capacity_bytes():
    try:
        cap = getattr(pltpu.get_tpu_info(), "vmem_capacity_bytes", None)
        if cap:
            return int(cap)
    except Exception:
        pass
    return 64 * 1024 * 1024  # conservative: v7x per-TC physical VMEM


def _pick_rows(B, row_bytes, budget, *, sublane_aligned, min_steps=4):
    """Largest divisor of B whose block fits `budget`, preferring >= min_steps grid
    steps (2 per v7x TensorCore keeps the prefetch/writeback pipeline busy).
    For the flat 2-D layout the batch tile is the sublane dim, so it must be a
    multiple of 8 (or the full batch)."""
    cands = [d for d in range(1, B + 1) if B % d == 0]
    if sublane_aligned:
        cands = [d for d in cands if d % 8 == 0 or d == B]
    fitting = [d for d in cands if d * row_bytes <= budget]
    if not fitting:
        # TODO(synk): add an L-tiled (PAD-halo) fallback so huge C*L rows can still
        # be double-buffered instead of issuing one oversized block.
        return min(cands)
    multi = [d for d in fitting if B // d >= min_steps]
    return max(multi) if multi else max(fitting)


def spatial_attention(x, conv_weight, *, block_budget_bytes=8 * 1024 * 1024):
    """x: (B, C, L); conv_weight: (1, 2, K) float (PyTorch Conv1d layout).

    Works for f32 or bf16 `x`; pooling/conv run in f32, the block-wide scale
    stays in the input dtype (packed bf16 VALU on v6e/v7x)."""
    B, C, L = x.shape
    itemsize = jnp.dtype(x.dtype).itemsize
    w_flat = conv_weight.reshape(-1).astype(jnp.float32)   # (2*K,): avg taps then max taps
    row_bytes = C * L * itemsize

    use_flat = (C <= 64) and (L % 128 == 0)

    if use_flat:
        Bt = _pick_rows(B, row_bytes, block_budget_bytes, sublane_aligned=True)
        kernel = functools.partial(_flat_kernel, C=C, L=L)
        x_in = x.reshape(B, C * L)      # contiguous reshape: free, single-pass HBM traffic
        in_spec = pl.BlockSpec((Bt, C * L), lambda i: (i, 0))
        out_spec = pl.BlockSpec((Bt, C * L), lambda i: (i, 0))
        out_shape = jax.ShapeDtypeStruct((B, C * L), x.dtype)
    else:
        Bt = _pick_rows(B, row_bytes, block_budget_bytes, sublane_aligned=False)
        kernel = _nc_kernel
        x_in = x
        in_spec = pl.BlockSpec((Bt, C, L), lambda i: (i, 0, 0))
        out_spec = pl.BlockSpec((Bt, C, L), lambda i: (i, 0, 0))
        out_shape = jax.ShapeDtypeStruct((B, C, L), x.dtype)

    block_bytes = Bt * row_bytes
    # 2x double-buffered input + 2x output + pooled temps/headroom; cap at ~75% of
    # physical VMEM (=> ~48 MiB on v7x, ~96 MiB on v5e/v6e).
    vmem_ceiling = (_vmem_capacity_bytes() * 3) // 4
    vmem_limit = int(min(vmem_ceiling,
                         max(8 * 1024 * 1024, 5 * block_bytes + (2 << 20))))

    y = pl.pallas_call(
        kernel,
        out_shape=out_shape,
        grid_spec=pltpu.PrefetchScalarGridSpec(
            num_scalar_prefetch=0,
            grid=(B // Bt,),
            in_specs=[
                pl.BlockSpec(memory_space=pltpu.MemorySpace.SMEM),  # conv taps
                in_spec,
            ],
            out_specs=out_spec,
        ),
        compiler_params=pltpu.CompilerParams(
            dimension_semantics=("parallel",),
            vmem_limit_bytes=vmem_limit,
        ),
        # NOTE: input_output_aliases={1: 0} is safe (each block is fully read
        # before it is written) and halves HBM footprint when the caller donates x.
    )(w_flat, x_in)

    return y.reshape(B, C, L) if use_flat else y


def spatial_attention_ref(x, conv_weight):
    """Pure-JAX reference mirroring the PyTorch forward."""
    avg = jnp.mean(x, axis=1, keepdims=True)          # (B, 1, L)
    mx = jnp.max(x, axis=1, keepdims=True)            # (B, 1, L)
    feat = jnp.concatenate([avg, mx], axis=1)         # (B, 2, L)
    out = jax.lax.conv_general_dilated(
        feat, conv_weight, window_strides=(1,), padding=[(PAD, PAD)],
        dimension_numbers=("NCH", "OIH", "NCH"))      # (B, 1, L)
    return x * jax.nn.sigmoid(out)


if __name__ == "__main__":
    B, C, L = 8, 4, 512   # small demo; L lane-dense (multiple of 128)

    key = jax.random.PRNGKey(0)
    kx, kw = jax.random.split(key)
    x = jax.random.normal(kx, (B, C, L), dtype=jnp.float32)
    # deterministic Conv1d weight, PyTorch shape (out=1, in=2, K=7)
    conv_weight = (jax.random.normal(kw, (1, 2, KERNEL_SIZE), dtype=jnp.float32)
                   * 0.1)

    y_ref = spatial_attention_ref(x, conv_weight)
    y = jax.block_until_ready(spatial_attention(x, conv_weight))

    assert y.shape == x.shape
    assert jnp.allclose(y, y_ref, atol=2e-5, rtol=2e-5), "mismatch vs reference"
    print("KERNEL_OK")
</pallas_src>

<mosaic_0001>
module attributes {stable_mosaic.version = 11 : i64} {
  func.func @_flat_kernel(%arg0: i32, %arg1: memref<14xf32, #tpu.memory_space<smem>>, %arg2: memref<8x2048xf32, #tpu.memory_space<vmem>>, %arg3: memref<8x2048xf32, #tpu.memory_space<vmem>>) attributes {dimension_semantics = [#tpu.dimension_semantics<parallel>], iteration_bounds = array<i64: 1>, scalar_prefetch = 0 : i64, scratch_operands = 0 : i64, tpu.core_type = #tpu.core_type<tc>, window_params = [{transform_indices = @transform_0, window_bounds = array<i64: 14>}, {transform_indices = @transform_1, window_bounds = array<i64: 8, 2048>}, {transform_indices = @transform_2, window_bounds = array<i64: 8, 2048>}]} {
    %c0 = arith.constant 0 : index
    %c0_0 = arith.constant 0 : index
    %0 = vector.load %arg2[%c0, %c0_0] : memref<8x2048xf32, #tpu.memory_space<vmem>>, vector<8x512xf32>
    %c0_1 = arith.constant 0 : index
    %c512 = arith.constant 512 : index
    %1 = vector.load %arg2[%c0_1, %c512] : memref<8x2048xf32, #tpu.memory_space<vmem>>, vector<8x512xf32>
    %2 = arith.addf %0, %1 : vector<8x512xf32>
    %3 = arith.maximumf %0, %1 : vector<8x512xf32>
    %c0_2 = arith.constant 0 : index
    %c1024 = arith.constant 1024 : index
    %4 = vector.load %arg2[%c0_2, %c1024] : memref<8x2048xf32, #tpu.memory_space<vmem>>, vector<8x512xf32>
    %5 = arith.addf %2, %4 : vector<8x512xf32>
    %6 = arith.maximumf %3, %4 : vector<8x512xf32>
    %c0_3 = arith.constant 0 : index
    %c1536 = arith.constant 1536 : index
    %7 = vector.load %arg2[%c0_3, %c1536] : memref<8x2048xf32, #tpu.memory_space<vmem>>, vector<8x512xf32>
    %8 = arith.addf %5, %7 : vector<8x512xf32>
    %9 = arith.maximumf %6, %7 : vector<8x512xf32>
    %cst = arith.constant 2.500000e-01 : f32
    %10 = vector.broadcast %cst : f32 to vector<8x512xf32>
    %11 = arith.mulf %8, %10 : vector<8x512xf32>
    %12 = tpu.iota {dimensions = array<i32: 1>} : vector<8x512xi32>
    %cst_4 = arith.constant 0.000000e+00 : f32
    %13 = vector.broadcast %cst_4 : f32 to vector<8x512xf32>
    %c0_5 = arith.constant 0 : index
    %14 = memref.load %arg1[%c0_5] : memref<14xf32, #tpu.memory_space<smem>>
    %c7 = arith.constant 7 : index
    %15 = memref.load %arg1[%c7] : memref<14xf32, #tpu.memory_space<smem>>
    %c3_i32 = arith.constant 3 : i32
    %16 = tpu.dynamic_rotate %11 by %c3_i32 dim 1 : vector<8x512xf32>, i32 -> vector<8x512xf32>
    %c3_i32_6 = arith.constant 3 : i32
    %17 = tpu.dynamic_rotate %9 by %c3_i32_6 dim 1 : vector<8x512xf32>, i32 -> vector<8x512xf32>
    %18 = vector.broadcast %14 : f32 to vector<8x512xf32>
    %19 = arith.mulf %18, %16 : vector<8x512xf32>
    %20 = vector.broadcast %15 : f32 to vector<8x512xf32>
    %21 = arith.mulf %20, %17 : vector<8x512xf32>
    %22 = arith.addf %19, %21 : vector<8x512xf32>
    %c3_i32_7 = arith.constant 3 : i32
    %23 = vector.broadcast %c3_i32_7 : i32 to vector<8x512xi32>
    %24 = arith.cmpi sge, %12, %23 : vector<8x512xi32>
    %cst_8 = arith.constant 0.000000e+00 : f32
    %25 = vector.broadcast %cst_8 : f32 to vector<8x512xf32>
    %26 = arith.select %24, %22, %25 : vector<8x512xi1>, vector<8x512xf32>
    %27 = arith.addf %13, %26 : vector<8x512xf32>
    %c1 = arith.constant 1 : index
    %28 = memref.load %arg1[%c1] : memref<14xf32, #tpu.memory_space<smem>>
    %c8 = arith.constant 8 : index
    %29 = memref.load %arg1[%c8] : memref<14xf32, #tpu.memory_space<smem>>
    %c2_i32 = arith.constant 2 : i32
    %30 = tpu.dynamic_rotate %11 by %c2_i32 dim 1 : vector<8x512xf32>, i32 -> vector<8x512xf32>
    %c2_i32_9 = arith.constant 2 : i32
    %31 = tpu.dynamic_rotate %9 by %c2_i32_9 dim 1 : vector<8x512xf32>, i32 -> vector<8x512xf32>
    %32 = vector.broadcast %28 : f32 to vector<8x512xf32>
    %33 = arith.mulf %32, %30 : vector<8x512xf32>
    %34 = vector.broadcast %29 : f32 to vector<8x512xf32>
    %35 = arith.mulf %34, %31 : vector<8x512xf32>
    %36 = arith.addf %33, %35 : vector<8x512xf32>
    %c2_i32_10 = arith.constant 2 : i32
    %37 = vector.broadcast %c2_i32_10 : i32 to vector<8x512xi32>
    %38 = arith.cmpi sge, %12, %37 : vector<8x512xi32>
    %cst_11 = arith.constant 0.000000e+00 : f32
    %39 = vector.broadcast %cst_11 : f32 to vector<8x512xf32>
    %40 = arith.select %38, %36, %39 : vector<8x512xi1>, vector<8x512xf32>
    %41 = arith.addf %27, %40 : vector<8x512xf32>
    %c2 = arith.constant 2 : index
    %42 = memref.load %arg1[%c2] : memref<14xf32, #tpu.memory_space<smem>>
    %c9 = arith.constant 9 : index
    %43 = memref.load %arg1[%c9] : memref<14xf32, #tpu.memory_space<smem>>
    %c1_i32 = arith.constant 1 : i32
    %44 = tpu.dynamic_rotate %11 by %c1_i32 dim 1 : vector<8x512xf32>, i32 -> vector<8x512xf32>
    %c1_i32_12 = arith.constant 1 : i32
    %45 = tpu.dynamic_rotate %9 by %c1_i32_12 dim 1 : vector<8x512xf32>, i32 -> vector<8x512xf32>
    %46 = vector.broadcast %42 : f32 to vector<8x512xf32>
    %47 = arith.mulf %46, %44 : vector<8x512xf32>
    %48 = vector.broadcast %43 : f32 to vector<8x512xf32>
    %49 = arith.mulf %48, %45 : vector<8x512xf32>
    %50 = arith.addf %47, %49 : vector<8x512xf32>
    %c1_i32_13 = arith.constant 1 : i32
    %51 = vector.broadcast %c1_i32_13 : i32 to vector<8x512xi32>
    %52 = arith.cmpi sge, %12, %51 : vector<8x512xi32>
    %cst_14 = arith.constant 0.000000e+00 : f32
    %53 = vector.broadcast %cst_14 : f32 to vector<8x512xf32>
    %54 = arith.select %52, %50, %53 : vector<8x512xi1>, vector<8x512xf32>
    %55 = arith.addf %41, %54 : vector<8x512xf32>
    %c3 = arith.constant 3 : index
    %56 = memref.load %arg1[%c3] : memref<14xf32, #tpu.memory_space<smem>>
    %c10 = arith.constant 10 : index
    %57 = memref.load %arg1[%c10] : memref<14xf32, #tpu.memory_space<smem>>
    %58 = vector.broadcast %56 : f32 to vector<8x512xf32>
    %59 = arith.mulf %58, %11 : vector<8x512xf32>
    %60 = arith.addf %55, %59 : vector<8x512xf32>
    %61 = vector.broadcast %57 : f32 to vector<8x512xf32>
    %62 = arith.mulf %61, %9 : vector<8x512xf32>
    %63 = arith.addf %60, %62 : vector<8x512xf32>
    %c4 = arith.constant 4 : index
    %64 = memref.load %arg1[%c4] : memref<14xf32, #tpu.memory_space<smem>>
    %c11 = arith.constant 11 : index
    %65 = memref.load %arg1[%c11] : memref<14xf32, #tpu.memory_space<smem>>
    %c511_i32 = arith.constant 511 : i32
    %66 = tpu.dynamic_rotate %11 by %c511_i32 dim 1 : vector<8x512xf32>, i32 -> vector<8x512xf32>
    %c511_i32_15 = arith.constant 511 : i32
    %67 = tpu.dynamic_rotate %9 by %c511_i32_15 dim 1 : vector<8x512xf32>, i32 -> vector<8x512xf32>
    %68 = vector.broadcast %64 : f32 to vector<8x512xf32>
    %69 = arith.mulf %68, %66 : vector<8x512xf32>
    %70 = vector.broadcast %65 : f32 to vector<8x512xf32>
    %71 = arith.mulf %70, %67 : vector<8x512xf32>
    %72 = arith.addf %69, %71 : vector<8x512xf32>
    %c511_i32_16 = arith.constant 511 : i32
    %73 = vector.broadcast %c511_i32_16 : i32 to vector<8x512xi32>
    %74 = arith.cmpi slt, %12, %73 : vector<8x512xi32>
    %cst_17 = arith.constant 0.000000e+00 : f32
    %75 = vector.broadcast %cst_17 : f32 to vector<8x512xf32>
    %76 = arith.select %74, %72, %75 : vector<8x512xi1>, vector<8x512xf32>
    %77 = arith.addf %63, %76 : vector<8x512xf32>
    %c5 = arith.constant 5 : index
    %78 = memref.load %arg1[%c5] : memref<14xf32, #tpu.memory_space<smem>>
    %c12 = arith.constant 12 : index
    %79 = memref.load %arg1[%c12] : memref<14xf32, #tpu.memory_space<smem>>
    %c510_i32 = arith.constant 510 : i32
    %80 = tpu.dynamic_rotate %11 by %c510_i32 dim 1 : vector<8x512xf32>, i32 -> vector<8x512xf32>
    %c510_i32_18 = arith.constant 510 : i32
    %81 = tpu.dynamic_rotate %9 by %c510_i32_18 dim 1 : vector<8x512xf32>, i32 -> vector<8x512xf32>
    %82 = vector.broadcast %78 : f32 to vector<8x512xf32>
    %83 = arith.mulf %82, %80 : vector<8x512xf32>
    %84 = vector.broadcast %79 : f32 to vector<8x512xf32>
    %85 = arith.mulf %84, %81 : vector<8x512xf32>
    %86 = arith.addf %83, %85 : vector<8x512xf32>
    %c510_i32_19 = arith.constant 510 : i32
    %87 = vector.broadcast %c510_i32_19 : i32 to vector<8x512xi32>
    %88 = arith.cmpi slt, %12, %87 : vector<8x512xi32>
    %cst_20 = arith.constant 0.000000e+00 : f32
    %89 = vector.broadcast %cst_20 : f32 to vector<8x512xf32>
    %90 = arith.select %88, %86, %89 : vector<8x512xi1>, vector<8x512xf32>
    %91 = arith.addf %77, %90 : vector<8x512xf32>
    %c6 = arith.constant 6 : index
    %92 = memref.load %arg1[%c6] : memref<14xf32, #tpu.memory_space<smem>>
    %c13 = arith.constant 13 : index
    %93 = memref.load %arg1[%c13] : memref<14xf32, #tpu.memory_space<smem>>
    %c509_i32 = arith.constant 509 : i32
    %94 = tpu.dynamic_rotate %11 by %c509_i32 dim 1 : vector<8x512xf32>, i32 -> vector<8x512xf32>
    %c509_i32_21 = arith.constant 509 : i32
    %95 = tpu.dynamic_rotate %9 by %c509_i32_21 dim 1 : vector<8x512xf32>, i32 -> vector<8x512xf32>
    %96 = vector.broadcast %92 : f32 to vector<8x512xf32>
    %97 = arith.mulf %96, %94 : vector<8x512xf32>
    %98 = vector.broadcast %93 : f32 to vector<8x512xf32>
    %99 = arith.mulf %98, %95 : vector<8x512xf32>
    %100 = arith.addf %97, %99 : vector<8x512xf32>
    %c509_i32_22 = arith.constant 509 : i32
    %101 = vector.broadcast %c509_i32_22 : i32 to vector<8x512xi32>
    %102 = arith.cmpi slt, %12, %101 : vector<8x512xi32>
    %cst_23 = arith.constant 0.000000e+00 : f32
    %103 = vector.broadcast %cst_23 : f32 to vector<8x512xf32>
    %104 = arith.select %102, %100, %103 : vector<8x512xi1>, vector<8x512xf32>
    %105 = arith.addf %91, %104 : vector<8x512xf32>
    %106 = arith.negf %105 : vector<8x512xf32>
    %107 = math.exp %106 : vector<8x512xf32>
    %cst_24 = arith.constant 1.000000e+00 : f32
    %108 = vector.broadcast %cst_24 : f32 to vector<8x512xf32>
    %109 = arith.addf %108, %107 : vector<8x512xf32>
    %110 = arith.divf %108, %109 : vector<8x512xf32>
    %c0_25 = arith.constant 0 : index
    %c0_26 = arith.constant 0 : index
    %111 = vector.load %arg2[%c0_25, %c0_26] : memref<8x2048xf32, #tpu.memory_space<vmem>>, vector<8x512xf32>
    %112 = arith.mulf %111, %110 : vector<8x512xf32>
    %c0_27 = arith.constant 0 : index
    %c0_28 = arith.constant 0 : index
    %113 = vector.load %arg3[%c0_27, %c0_28] : memref<8x2048xf32, #tpu.memory_space<vmem>>, vector<8x512xf32>
    tpu.vector_store %arg3[%c0_27, %c0_28], %112 {strides = array<i32>} : memref<8x2048xf32, #tpu.memory_space<vmem>>, vector<8x512xf32>,
    %c0_29 = arith.constant 0 : index
    %c512_30 = arith.constant 512 : index
    %114 = vector.load %arg2[%c0_29, %c512_30] : memref<8x2048xf32, #tpu.memory_space<vmem>>, vector<8x512xf32>
    %115 = arith.mulf %114, %110 : vector<8x512xf32>
    %c0_31 = arith.constant 0 : index
    %c512_32 = arith.constant 512 : index
    %116 = vector.load %arg3[%c0_31, %c512_32] : memref<8x2048xf32, #tpu.memory_space<vmem>>, vector<8x512xf32>
    tpu.vector_store %arg3[%c0_31, %c512_32], %115 {strides = array<i32>} : memref<8x2048xf32, #tpu.memory_space<vmem>>, vector<8x512xf32>,
    %c0_33 = arith.constant 0 : index
    %c1024_34 = arith.constant 1024 : index
    %117 = vector.load %arg2[%c0_33, %c1024_34] : memref<8x2048xf32, #tpu.memory_space<vmem>>, vector<8x512xf32>
    %118 = arith.mulf %117, %110 : vector<8x512xf32>
    %c0_35 = arith.constant 0 : index
    %c1024_36 = arith.constant 1024 : index
    %119 = vector.load %arg3[%c0_35, %c1024_36] : memref<8x2048xf32, #tpu.memory_space<vmem>>, vector<8x512xf32>
    tpu.vector_store %arg3[%c0_35, %c1024_36], %118 {strides = array<i32>} : memref<8x2048xf32, #tpu.memory_space<vmem>>, vector<8x512xf32>,
    %c0_37 = arith.constant 0 : index
    %c1536_38 = arith.constant 1536 : index
    %120 = vector.load %arg2[%c0_37, %c1536_38] : memref<8x2048xf32, #tpu.memory_space<vmem>>, vector<8x512xf32>
    %121 = arith.mulf %120, %110 : vector<8x512xf32>
    %c0_39 = arith.constant 0 : index
    %c1536_40 = arith.constant 1536 : index
    %122 = vector.load %arg3[%c0_39, %c1536_40] : memref<8x2048xf32, #tpu.memory_space<vmem>>, vector<8x512xf32>
    tpu.vector_store %arg3[%c0_39, %c1536_40], %121 {strides = array<i32>} : memref<8x2048xf32, #tpu.memory_space<vmem>>, vector<8x512xf32>,
    return
  }
  func.func @transform_0(%arg0: i32) -> i32 {
    %c0_i32 = arith.constant 0 : i32
    %c0_i32_0 = arith.constant 0 : i32
    return %c0_i32 : i32
  }
  func.func @transform_1(%arg0: i32) -> (i32, i32) {
    %c0_i32 = arith.constant 0 : i32
    %c0_i32_0 = arith.constant 0 : i32
    return %arg0, %c0_i32 : i32, i32
  }
  func.func @transform_2(%arg0: i32) -> (i32, i32) {
    %c0_i32 = arith.constant 0 : i32
    %c0_i32_0 = arith.constant 0 : i32
    return %arg0, %c0_i32 : i32, i32
  }
}

</mosaic_0001>

<bundles_post_ra>
// kernel: tpu_custom_call.1
= control target key start
LH: loop header
LB: loop body
LE: loop exit
PB: predicated region body
PF: predicated region fallthrough
CT: control target
= control target key end

     0   :  { %7 = vsyncpa [#allocation5], 0  ;;  %s1085_s0 = inlined_call_operand.hbm [shape: f32[14], index: 0, kind: input, shape index: {}]   ;;  %s1086_s1 = inlined_call_operand.hbm [shape: f32[8,2048], index: 1, kind: input, shape index: {}]   ;;  %s1087_s2 = inlined_call_operand.hbm [shape: f32[8,2048], index: 2, kind: output, shape index: {}]  }
   0x1   :  { %8 = vsyncpa [#allocation3], 0 }
   0x2   :  { %9 = vsyncpa [#allocation4], 0  ;;  %s548_s11 = scalar_lea.hbm %s1085_s0, 16 }
   0x3   :  { %p549_p0 = scmp.ne.s32.totalorder %s1085_s0, %s548_s11  ;;  %p552_p1 = scmp.lt.u32.totalorder %s548_s11, %s1085_s0 }
   0x5   :  { %p554_p2 = pnand %p552_p1, %p549_p0 }
   0x7   :  { %557 = shalt.err (!%p554_p2)
}
   0x8   :  { %s608_s16 = smov [#allocation2]   ;;  %s609_s19 = smov [#allocation6]  }
   0x9   :  { %17 = dma.hbm_to_smem %s1085_s0, 16, %s608_s16, [#allocation5]  }
   0xa   :  { %s24_s20 = sshll.u32 %s609_s19, 4  ;;  %s558_s23 = scalar_lea.hbm %s1086_s1, 2048  ;;  %s25_s20 = int_to_ptr.vmem [resolvable:$true] %s24_s20 }
   0xb   :  { %p559_p3 = scmp.ne.s32.totalorder %s1086_s1, %s558_s23  ;;  %p562_p4 = scmp.lt.u32.totalorder %s558_s23, %s1086_s1 }
   0xd   :  { %p564_p5 = pnand %p562_p4, %p559_p3 }
   0xf   :  { %567 = shalt.err (!%p564_p5)
}
  0x10   :  { %s568_s28 = scalar_lea.vmem %s25_s20, 2048  ;;  %p573_p7 = scmp.lt.s32.totalorder %s25_s20, %s25_s20 }
  0x11   :  { %p569_p6 = scmp.ne.s32.totalorder %s25_s20, %s568_s28  ;;  %p574_p8 = scmp.lt.s32.totalorder %s568_s28, %s568_s28 }
  0x13   :  { %p575_p9 = por %p574_p8, %p573_p7 }
  0x15   :  { %p576_p10 = pnand %p575_p9, %p569_p6 }
  0x17   :  { %579 = shalt.err (!%p576_p10)
}
  0x18   :  { %27 = dma.hbm_to_vmem [thread:$0]  %s1086_s1, 2048, %s25_s20, [#allocation3]  }
  0x19   :  { %602 = dma.done.wait [#allocation5], 16  }
  0x1a   :  { %603 = vsyncadd [#allocation5], 4294967280 }
  0x1b   :  { %604 = dma.done.wait [#allocation3], 2048  }
  0x1c   :  { %605 = vsyncadd [#allocation3], 4294965248 }
  0x1d   :  { %34 = sfence }
  0x1e   :  { %v656_v0 = vld [vmem:[#allocation6] sm:$0xff]  ;;  %v666_v5 = vld [vmem:[#allocation6 + $0x18] sm:$0xff]  ;;  %v684_v16 = vld [vmem:[#allocation6 + $0x10] sm:$0xff]  ;;  %s610_s1 = smov 3   ;;  %s611_s30 = smov 2   ;;  %v79_v44 = vlaneseq }
  0x1f   :  { %v658_v1 = vld [vmem:[#allocation6 + $0x20] sm:$0xff]  ;;  %v668_v6 = vld [vmem:[#allocation6 + $0x38] sm:$0xff]  ;;  %v686_v17 = vld [vmem:[#allocation6 + $0x30] sm:$0xff]  ;;  %s612_s3 = smov 1   ;;  %s613_s4 = smov 127  }
  0x20   :  { %v660_v2 = vld [vmem:[#allocation6 + $0x40] sm:$0xff]  ;;  %v47_v3 = vmax.f32 %v656_v0, %v658_v1  ;;  %v43_v4 = vadd.f32 %v658_v1, %v656_v0  ;;  %v50_v8 = vmax.f32 %v666_v5, %v668_v6  ;;  %v674_v9 = vld [vmem:[#allocation6 + $0x58] sm:$0xff]  ;;  %v46_v10 = vadd.f32 %v668_v6, %v666_v5  ;;  %v693_v21 = vld [vmem:[#allocation6 + $0x8] sm:$0xff]  ;;  %s614_s5 = smov 126   ;;  %s615_s6 = smov 125  }
  0x21   :  { %v670_v7 = vld [vmem:[#allocation6 + $0x60] sm:$0xff]  ;;  %v680_v13 = vld [vmem:[#allocation6 + $0x78] sm:$0xff]  ;;  %1094 = vst [vmem:[#allocation12_spill] sm:$0xff] %v693_v21  ;;  %v695_v22 = vld [vmem:[#allocation6 + $0x28] sm:$0xff]  ;;  %v45_v25 = vadd.f32 %v686_v17, %v684_v16  ;;  %v49_v35 = vmax.f32 %v684_v16, %v686_v17  ;;  %s506_s7 = sld [smem:[#allocation2 + $0x7]]  ;;  %s84_s8 = sld [smem:[#allocation2]] }
  0x22   :  { %1093 = vst [vmem:[#allocation11_spill] sm:$0xff] %v670_v7  ;;  %v59_v11 = vmax.f32 %v47_v3, %v660_v2  ;;  %v55_v12 = vadd.f32 %v660_v2, %v43_v4  ;;  %v62_v14 = vmax.f32 %v50_v8, %v674_v9  ;;  %v58_v15 = vadd.f32 %v674_v9, %v46_v10  ;;  %v706_v26 = vld [vmem:[#allocation6 + $0x50] sm:$0xff]  ;;  %v714_v29 = vld [vmem:[#allocation6 + $0x48] sm:$0xff]  ;;  %s507_s9 = sld [smem:[#allocation2 + $0x1]]  ;;  %s508_s10 = sld [smem:[#allocation2 + $0x8]] }
  0x23   :  { %1095 = vst [vmem:[#allocation13_spill] sm:$0xff] %v695_v22  ;;  %v44_v28 = vadd.f32 %v695_v22, %v693_v21  ;;  %1096 = vst [vmem:[#allocation14_spill] sm:$0xff] %v714_v29  ;;  %v57_v30 = vadd.f32 %v706_v26, %v45_v25  ;;  %v719_v31 = vld [vmem:[#allocation6 + $0x70] sm:$0xff]  ;;  %v724_v33 = vld [vmem:[#allocation6 + $0x68] sm:$0xff]  ;;  %v48_v37 = vmax.f32 %v693_v21, %v695_v22  ;;  %v792_v45 = vand.u32 127, %v79_v44  ;;  %s510_s11 = sld [smem:[#allocation2 + $0x9]] }
  0x24   :  { %v689_v18 = vmax.f32 %v59_v11, %v670_v7  ;;  %v67_v19 = vadd.f32 %v670_v7, %v55_v12  ;;  %v70_v20 = vadd.f32 %v680_v13, %v58_v15  ;;  %v702_v24 = vmax.f32 %v62_v14, %v680_v13  ;;  %1097 = vst [vmem:[#allocation15_spill] sm:$0xff] %v724_v33  ;;  %s509_s12 = sld [smem:[#allocation2 + $0x2]]  ;;  %s511_s13 = sld [smem:[#allocation2 + $0x3]] }
  0x25   :  { %v56_v32 = vadd.f32 %v714_v29, %v44_v28  ;;  %v69_v34 = vadd.f32 %v719_v31, %v57_v30  ;;  %v61_v39 = vmax.f32 %v49_v35, %v706_v26  ;;  %v60_v41 = vmax.f32 %v48_v37, %v714_v29  ;;  %s512_s14 = sld [smem:[#allocation2 + $0xa]]  ;;  %s879_s15 = sld [smem:[#allocation2 + $0x4]] }
  0x26   :  { %99 = vrot.lane.b32.xlu1 %v689_v18, %s610_s1  ;;  %v699_v23 = vmul.f32 0.25, %v67_v19  ;;  %v710_v27 = vmul.f32 0.25, %v70_v20  ;;  %vm94_vm0 = vcmp.lt.s32.totalorder %v792_v45, 3  ;;  %vm147_vm1 = vcmp.lt.s32.totalorder %v792_v45, 2  ;;  %s893_s16 = sld [smem:[#allocation2 + $0xb]]  ;;  %s908_s17 = sld [smem:[#allocation2 + $0x5]] }
  0x27   :  { %v68_v36 = vadd.f32 %v724_v33, %v56_v32  ;;  %v735_v38 = vmul.f32 0.25, %v69_v34  ;;  %v745_v42 = vmax.f32 %v61_v39, %v719_v31  ;;  %v750_v43 = vmax.f32 %v60_v41, %v724_v33  ;;  %s917_s18 = sld [smem:[#allocation2 + $0xc]]  ;;  %s923_s19 = sld [smem:[#allocation2 + $0x6]] }
  0x28   :  { %86 = vrot.lane.b32.xlu0 %v699_v23, %s610_s1  ;;  %v795_v49 = vstv %s506_s7  ;;  %v799_v51 = vstv %s84_s8  ;;  %v808_v61 = vstv %s507_s9  ;;  %vm125_vm2 = vcmp.ge.s32.totalorder %v792_v45, 3  ;;  %s934_s20 = sld [smem:[#allocation2 + $0xd]]  ;;  %s616_s21 = smov [#allocation7]  }
  0x29   :  { %v739_v40 = vmul.f32 0.25, %v68_v36  ;;  %v810_v62 = vstv %s508_s10  ;;  %vm178_vm3 = vcmp.ge.s32.totalorder %v792_v45, 2  ;;  %vm200_vm4 = vcmp.lt.s32.totalorder %v792_v45, 1  ;;  %s496_s22 = sshll.u32 %s616_s21, 4  ;;  %s497_s22 = int_to_ptr.vmem [resolvable:$true] %s496_s22 }
  0x2a   :  { %105 = vrot.lane.b32.xlu1 %v702_v24, %s610_s1  ;;  %vm231_vm5 = vcmp.ge.s32.totalorder %v792_v45, 1  ;;  %vm273_vm6 = vcmp.lt.s32.totalorder %v792_v45, 127  ;;  %vm326_vm8 = vcmp.lt.s32.totalorder %v792_v45, 126  ;;  %vm379_vm10 = vcmp.lt.s32.totalorder %v792_v45, 125  ;;  %s580_s23 = scalar_lea.vmem %s497_s22, 2048  ;;  %p585_p12 = scmp.lt.s32.totalorder %s497_s22, %s497_s22 }
  0x2b   :  { %p581_p11 = scmp.ne.s32.totalorder %s497_s22, %s580_s23  ;;  %p586_p13 = scmp.lt.s32.totalorder %s580_s23, %s580_s23 }
  0x2c   :  { %92 = vrot.lane.b32.xlu0 %v710_v27, %s610_s1 }
  0x2d   :  { %p587_p0 = por %p586_p13, %p585_p12 }
  0x2e   :  { %145 = vrot.lane.b32.xlu1 %v710_v27, %s611_s30 }
  0x2f   :  { %p588_p1 = pnand %p587_p0, %p581_p11 }
  0x30   :  { %139 = vrot.lane.b32.xlu0 %v699_v23, %s611_s30 }
  0x32   :  { %158 = vrot.lane.b32.xlu1 %v702_v24, %s611_s30 }
  0x34   :  { %152 = vrot.lane.b32.xlu0 %v689_v18, %s611_s30 }
  0x36   :  { %90 = vrot.lane.b32.xlu1 %v735_v38, %s610_s1 }
  0x38   :  { %88 = vrot.lane.b32.xlu0 %v739_v40, %s610_s1 }
  0x3a   :  { %103 = vrot.lane.b32.xlu1 %v745_v42, %s610_s1 }
  0x3c   :  { %101 = vrot.lane.b32.xlu0 %v750_v43, %s610_s1 }
  0x3e   :  { %143 = vrot.lane.b32.xlu1 %v735_v38, %s611_s30 }
  0x40   :  { %141 = vrot.lane.b32.xlu0 %v739_v40, %s611_s30 }
  0x42   :  { %156 = vrot.lane.b32.xlu1 %v745_v42, %s611_s30 }
  0x44   :  { %154 = vrot.lane.b32.xlu0 %v750_v43, %s611_s30 }
  0x46   :  { %198 = vrot.lane.b32.xlu1 %v710_v27, %s612_s3 }
  0x48   :  { %192 = vrot.lane.b32.xlu0 %v699_v23, %s612_s3 }
  0x4a   :  { %211 = vrot.lane.b32.xlu1 %v702_v24, %s612_s3 }
  0x4c   :  { %205 = vrot.lane.b32.xlu0 %v689_v18, %s612_s3 }
  0x4e   :  { %196 = vrot.lane.b32.xlu1 %v735_v38, %s612_s3 }
  0x50   :  { %194 = vrot.lane.b32.xlu0 %v739_v40, %s612_s3 }
  0x52   :  { %209 = vrot.lane.b32.xlu1 %v745_v42, %s612_s3 }
  0x54   :  { %207 = vrot.lane.b32.xlu0 %v750_v43, %s612_s3 }
  0x56   :  { %271 = vrot.lane.b32.xlu1 %v710_v27, %s613_s4 }
  0x58   :  { %265 = vrot.lane.b32.xlu0 %v699_v23, %s613_s4 }
  0x5a   :  { %284 = vrot.lane.b32.xlu1 %v702_v24, %s613_s4 }
  0x5c   :  { %278 = vrot.lane.b32.xlu0 %v689_v18, %s613_s4 }
  0x5e   :  { %269 = vrot.lane.b32.xlu1 %v735_v38, %s613_s4 }
  0x60   :  { %267 = vrot.lane.b32.xlu0 %v739_v40, %s613_s4 }
  0x62   :  { %282 = vrot.lane.b32.xlu1 %v745_v42, %s613_s4 }
  0x64   :  { %280 = vrot.lane.b32.xlu0 %v750_v43, %s613_s4 }
  0x66   :  { %324 = vrot.lane.b32.xlu1 %v710_v27, %s614_s5 }
  0x68   :  { %318 = vrot.lane.b32.xlu0 %v699_v23, %s614_s5 }
  0x6a   :  { %337 = vrot.lane.b32.xlu1 %v702_v24, %s614_s5 }
  0x6c   :  { %331 = vrot.lane.b32.xlu0 %v689_v18, %s614_s5 }
  0x6e   :  { %322 = vrot.lane.b32.xlu1 %v735_v38, %s614_s5 }
  0x70   :  { %320 = vrot.lane.b32.xlu0 %v739_v40, %s614_s5 }
  0x72   :  { %335 = vrot.lane.b32.xlu1 %v745_v42, %s614_s5 }
  0x74   :  { %333 = vrot.lane.b32.xlu0 %v750_v43, %s614_s5 }
  0x76   :  { %377 = vrot.lane.b32.xlu1 %v710_v27, %s615_s6 }
  0x78   :  { %371 = vrot.lane.b32.xlu0 %v699_v23, %s615_s6 }
  0x7a   :  { %390 = vrot.lane.b32.xlu1 %v702_v24, %s615_s6 }
  0x7c   :  { %384 = vrot.lane.b32.xlu0 %v689_v18, %s615_s6 }
  0x7e   :  { %375 = vrot.lane.b32.xlu1 %v735_v38, %s615_s6 }
  0x80   :  { %373 = vrot.lane.b32.xlu0 %v739_v40, %s615_s6 }
  0x82   :  { %388 = vrot.lane.b32.xlu1 %v745_v42, %s615_s6 }
  0x84   :  { %386 = vrot.lane.b32.xlu0 %v750_v43, %s615_s6 }
  0x98   :  { %v100_v46 = vpop.permute.xlu1 %99 }
  0x9a   :  { %v87_v47 = vpop.permute.xlu0 %86 }
  0x9c   :  { %v106_v48 = vpop.permute.xlu1 %105 }
  0x9d   :  { %v110_v50 = vsel %vm94_vm0, %v106_v48, %v100_v46 }
  0x9e   :  { %v93_v52 = vpop.permute.xlu0 %92  ;;  %v117_v54 = vmul.f32 %v795_v49, %v110_v50 }
  0x9f   :  { %v98_v53 = vsel %vm94_vm0, %v93_v52, %v87_v47 }
  0xa0   :  { %v112_v55 = vmul.f32 %v799_v51, %v98_v53  ;;  %v146_v56 = vpop.permute.xlu1 %145 }
  0xa2   :  { %v121_v57 = vadd.f32 %v117_v54, %v112_v55  ;;  %v140_v58 = vpop.permute.xlu0 %139 }
  0xa3   :  { %v151_v59 = vsel %vm147_vm1, %v146_v56, %v140_v58 }
  0xa4   :  { %v159_v60 = vpop.permute.xlu1 %158  ;;  %v165_v4 = vmul.f32 %v808_v61, %v151_v59  ;;  %v129_v19 = vsel %vm125_vm2, %v121_v57, 0.0 }
  0xa6   :  { %v153_v63 = vpop.permute.xlu0 %152 }
  0xa7   :  { %v163_v3 = vsel %vm147_vm1, %v159_v60, %v153_v63 }
  0xa8   :  { %v170_v8 = vmul.f32 %v810_v62, %v163_v3  ;;  %v816_v10 = vpop.permute.xlu1 %90 }
  0xa9   :  { %v95_v14 = vsel %vm94_vm0, %v816_v10, %v93_v52 }
  0xaa   :  { %v174_v11 = vadd.f32 %v170_v8, %v165_v4  ;;  %v820_v12 = vpop.permute.xlu0 %88  ;;  %v115_v32 = vmul.f32 %v799_v51, %v95_v14 }
  0xab   :  { %v97_v15 = vsel %vm94_vm0, %v87_v47, %v820_v12 }
  0xac   :  { %v182_v20 = vsel %vm178_vm3, %v174_v11, 0.0  ;;  %v104_v25 = vpop.permute.xlu1 %103  ;;  %v113_v37 = vmul.f32 %v799_v51, %v97_v15 }
  0xad   :  { %v828_v28 = vadd.f32 %v182_v20, %v129_v19  ;;  %v107_v30 = vsel %vm94_vm0, %v104_v25, %v106_v48 }
  0xae   :  { %v120_v34 = vmul.f32 %v795_v49, %v107_v30  ;;  %v102_v35 = vpop.permute.xlu0 %101 }
  0xaf   :  { %v109_v36 = vsel %vm94_vm0, %v100_v46, %v102_v35  ;;  %v108_v22 = vsel %vm94_vm0, %v102_v35, %v104_v25 }
  0xb0   :  { %v124_v39 = vadd.f32 %v120_v34, %v115_v32  ;;  %v118_v41 = vmul.f32 %v795_v49, %v109_v36  ;;  %v144_v44 = vpop.permute.xlu1 %143 }
  0xb1   :  { %v148_v52 = vsel %vm147_vm1, %v144_v44, %v146_v56 }
  0xb2   :  { %v122_v47 = vadd.f32 %v118_v41, %v113_v37  ;;  %v142_v50 = vpop.permute.xlu0 %141  ;;  %v168_v46 = vmul.f32 %v808_v61, %v148_v52 }
  0xb3   :  { %v150_v53 = vsel %vm147_vm1, %v140_v58, %v142_v50  ;;  %v149_v21 = vsel %vm147_vm1, %v142_v50, %v144_v44  ;;  %v119_v44 = vmul.f32 %v795_v49, %v108_v22 }
  0xb4   :  { %v157_v48 = vpop.permute.xlu1 %156  ;;  %v166_v3 = vmul.f32 %v808_v61, %v150_v53 }
  0xb5   :  { %v160_v54 = vsel %vm147_vm1, %v157_v48, %v159_v60 }
  0xb6   :  { %v173_v55 = vmul.f32 %v810_v62, %v160_v54  ;;  %v155_v57 = vpop.permute.xlu0 %154  ;;  %v217_v54 = vstv %s509_s12 }
  0xb7   :  { %v162_v59 = vsel %vm147_vm1, %v153_v63, %v155_v57  ;;  %v161_v33 = vsel %vm147_vm1, %v155_v57, %v157_v48 }
  0xb8   :  { %v177_v4 = vadd.f32 %v173_v55, %v168_v46  ;;  %v171_v56 = vmul.f32 %v810_v62, %v162_v59  ;;  %v199_v8 = vpop.permute.xlu1 %198  ;;  %v172_v25 = vmul.f32 %v810_v62, %v161_v33 }
  0xba   :  { %v850_v11 = vadd.f32 %v177_v4, %v124_v39  ;;  %v175_v58 = vadd.f32 %v171_v56, %v166_v3  ;;  %v193_v14 = vpop.permute.xlu0 %192  ;;  %v245_v56 = vstv %s511_s13 }
  0xbb   :  { %v204_v46 = vsel %vm200_vm4, %v199_v8, %v193_v14  ;;  %v249_v35 = vmul.f32 %v245_v56, %v710_v27  ;;  %v167_v27 = vmul.f32 %v808_v61, %v149_v21 }
  0xbc   :  { %v852_v15 = vadd.f32 %v175_v58, %v122_v47  ;;  %v212_v60 = vpop.permute.xlu1 %211  ;;  %v222_v47 = vstv %s510_s11  ;;  %v218_v4 = vmul.f32 %v217_v54, %v204_v46 }
  0xbd   :  { %v176_v61 = vadd.f32 %v172_v25, %v167_v27  ;;  %v348_v27 = vstv %s917_s18 }
  0xbe   :  { %v206_v19 = vpop.permute.xlu0 %205 }
  0xbf   :  { %v216_v52 = vsel %vm200_vm4, %v212_v60, %v206_v19 }
  0xc0   :  { %v197_v20 = vpop.permute.xlu1 %196  ;;  %v223_v59 = vmul.f32 %v222_v47, %v216_v52 }
  0xc1   :  { %v201_v46 = vsel %vm200_vm4, %v197_v20, %v199_v8 }
  0xc2   :  { %v195_v30 = vpop.permute.xlu0 %194  ;;  %v227_v52 = vadd.f32 %v223_v59, %v218_v4  ;;  %v254_v59 = vstv %s512_s14  ;;  %v221_v50 = vmul.f32 %v217_v54, %v201_v46  ;;  %v290_v4 = vstv %s879_s15 }
  0xc3   :  { %v258_v46 = vmul.f32 %v254_v59, %v702_v24  ;;  %v949_v24 = vmul.f32 %v254_v59, %v750_v43 }
  0xc4   :  { %v210_v32 = vpop.permute.xlu1 %209  ;;  %v235_v62 = vsel %vm231_vm5, %v227_v52, 0.0 }
  0xc5   :  { %v213_v58 = vsel %vm200_vm4, %v210_v32, %v212_v60  ;;  %v246_v60 = vmul.f32 %v245_v56, %v699_v23  ;;  %v96_v23 = vsel %vm94_vm0, %v820_v12, %v816_v10  ;;  %v255_v12 = vmul.f32 %v254_v59, %v689_v18 }
  0xc6   :  { %v208_v34 = vpop.permute.xlu0 %207  ;;  %v226_v7 = vmul.f32 %v222_v47, %v213_v58  ;;  %v114_v21 = vmul.f32 %v799_v51, %v96_v23  ;;  %v248_v51 = vmul.f32 %v245_v56, %v735_v38  ;;  %v257_v38 = vmul.f32 %v254_v59, %v745_v42 }
  0xc7   :  { %v214_v48 = vsel %vm200_vm4, %v208_v34, %v210_v32  ;;  %v215_v8 = vsel %vm200_vm4, %v206_v19, %v208_v34  ;;  %v202_v32 = vsel %vm200_vm4, %v195_v30, %v197_v20  ;;  %v203_v19 = vsel %vm200_vm4, %v193_v14, %v195_v30 }
  0xc8   :  { %v854_v36 = vpop.permute.xlu1 %271  ;;  %v225_v10 = vmul.f32 %v222_v47, %v214_v48  ;;  %v230_v22 = vadd.f32 %v226_v7, %v221_v50  ;;  %v224_v49 = vmul.f32 %v222_v47, %v215_v8  ;;  %v220_v34 = vmul.f32 %v217_v54, %v202_v32 }
  0xc9   :  { %v927_v14 = vadd.s32 384, %v792_v45  ;;  %v239_v30 = vadd.f32 %v235_v62, %v828_v28  ;;  %v219_v7 = vmul.f32 %v217_v54, %v203_v19  ;;  %v247_v47 = vmul.f32 %v245_v56, %v739_v40 }
  0xca   :  { %v856_v63 = vpop.permute.xlu0 %265  ;;  %v123_v18 = vadd.f32 %v119_v44, %v114_v21  ;;  %v229_v52 = vadd.f32 %v225_v10, %v220_v34  ;;  %v242_v48 = vadd.f32 %v230_v22, %v850_v11  ;;  %v295_v28 = vstv %s893_s16 }
  0xcb   :  { %v228_v25 = vadd.f32 %v224_v49, %v219_v7  ;;  %vm307_vm7 = vcmp.lt.s32.totalorder %v927_v14, 511  ;;  %v250_v11 = vadd.f32 %v246_v60, %v239_v30  ;;  %v277_v56 = vsel %vm273_vm6, %v854_v36, %v856_v63 }
  0xcc   :  { %v858_v37 = vpop.permute.xlu1 %284  ;;  %v188_v8 = vadd.f32 %v176_v61, %v123_v18  ;;  %v957_v23 = vstv %s908_s17  ;;  %vm360_vm9 = vcmp.lt.s32.totalorder %v927_v14, 510  ;;  %v253_v43 = vadd.f32 %v249_v35, %v242_v48 }
  0xcd   :  { %v240_v60 = vadd.f32 %v228_v25, %v852_v15  ;;  %v968_v62 = vstv %s923_s19  ;;  %v294_v19 = vmul.f32 %v290_v4, %v277_v56  ;;  %v259_v35 = vadd.f32 %v255_v12, %v250_v11 }
  0xce   :  { %v860_v39 = vpop.permute.xlu0 %278  ;;  %v241_v50 = vadd.f32 %v229_v52, %v188_v8  ;;  %v987_v34 = vstv %s934_s20  ;;  %vm413_vm11 = vcmp.lt.s32.totalorder %v927_v14, 509  ;;  %v262_v48 = vadd.f32 %v258_v46, %v253_v43 }
  0xcf   :  { %v289_v40 = vsel %vm273_vm6, %v858_v37, %v860_v39  ;;  %v251_v52 = vadd.f32 %v247_v47, %v240_v60 }
  0xd0   :  { %v862_v41 = vpop.permute.xlu1 %269  ;;  %v299_v32 = vmul.f32 %v295_v28, %v289_v40 }
  0xd2   :  { %v867_v53 = vpop.permute.xlu0 %267  ;;  %v303_v30 = vadd.f32 %v299_v32, %v294_v19 }
  0xd3   :  { %v276_v12 = vsel %vm273_vm6, %v856_v63, %v867_v53 }
  0xd4   :  { %v871_v55 = vpop.permute.xlu1 %282  ;;  %v291_v40 = vmul.f32 %v290_v4, %v276_v12  ;;  %v311_v11 = vsel %vm307_vm7, %v303_v30, 0.0 }
  0xd5   :  { %v286_v10 = vsel %vm273_vm6, %v871_v55, %v858_v37  ;;  %v252_v37 = vadd.f32 %v248_v51, %v241_v50 }
  0xd6   :  { %v873_v3 = vpop.permute.xlu0 %280 }
  0xd7   :  { %v288_v22 = vsel %vm273_vm6, %v860_v39, %v873_v3  ;;  %v287_v49 = vsel %vm273_vm6, %v873_v3, %v871_v55  ;;  %v274_v39 = vsel %vm273_vm6, %v862_v41, %v854_v36  ;;  %v275_v55 = vsel %vm273_vm6, %v867_v53, %v862_v41 }
  0xd8   :  { %v881_v29 = vpop.permute.xlu1 %324  ;;  %v298_v3 = vmul.f32 %v295_v28, %v286_v10  ;;  %v296_v7 = vmul.f32 %v295_v28, %v288_v22  ;;  %v297_v36 = vmul.f32 %v295_v28, %v287_v49  ;;  %v293_v63 = vmul.f32 %v290_v4, %v274_v39 }
  0xd9   :  { %v292_v56 = vmul.f32 %v290_v4, %v275_v55  ;;  %v261_v47 = vadd.f32 %v257_v38, %v252_v37  ;;  %v260_v49 = vadd.f32 %v949_v24, %v251_v52 }
  0xda   :  { %v895_v57 = vpop.permute.xlu0 %318  ;;  %v302_v28 = vadd.f32 %v298_v3, %v293_v63  ;;  %v300_v50 = vadd.f32 %v296_v7, %v291_v40 }
  0xdb   :  { %v330_v15 = vsel %vm326_vm8, %v881_v29, %v895_v57  ;;  %v301_v43 = vadd.f32 %v297_v36, %v292_v56 }
  0xdc   :  { %v910_v33 = vpop.permute.xlu1 %337  ;;  %v347_v18 = vmul.f32 %v957_v23, %v330_v15  ;;  %v315_v15 = vadd.f32 %v311_v11, %v262_v48 }
  0xde   :  { %v921_v20 = vpop.permute.xlu0 %331 }
  0xdf   :  { %v342_v42 = vsel %vm326_vm8, %v910_v33, %v921_v20 }
  0xe0   :  { %v932_v58 = vpop.permute.xlu1 %322  ;;  %v352_v21 = vmul.f32 %v348_v27, %v342_v42 }
  0xe1   :  { %v327_v41 = vsel %vm326_vm8, %v932_v58, %v881_v29 }
  0xe2   :  { %v944_v54 = vpop.permute.xlu0 %320  ;;  %v356_v8 = vadd.f32 %v352_v21, %v347_v18  ;;  %v346_v29 = vmul.f32 %v957_v23, %v327_v41  ;;  %v314_v21 = vadd.f32 %v302_v28, %v261_v47  ;;  %v313_v18 = vadd.f32 %v301_v43, %v260_v49 }
  0xe3   :  { %v329_v19 = vsel %vm326_vm8, %v895_v57, %v944_v54  ;;  %v312_v57 = vadd.f32 %v300_v50, %v259_v35 }
  0xe4   :  { %v336_v44 = vpop.permute.xlu1 %335  ;;  %v364_v38 = vsel %vm360_vm9, %v356_v8, 0.0  ;;  %v344_v3 = vmul.f32 %v957_v23, %v329_v19 }
  0xe5   :  { %v339_v25 = vsel %vm326_vm8, %v336_v44, %v910_v33  ;;  %v368_v55 = vadd.f32 %v364_v38, %v315_v15 }
  0xe6   :  { %v334_v59 = vpop.permute.xlu0 %333  ;;  %v351_v33 = vmul.f32 %v348_v27, %v339_v25 }
  0xe7   :  { %v341_v32 = vsel %vm326_vm8, %v921_v20, %v334_v59  ;;  %v340_v60 = vsel %vm326_vm8, %v334_v59, %v336_v44  ;;  %v328_v44 = vsel %vm326_vm8, %v944_v54, %v932_v58 }
  0xe8   :  { %v378_v61 = vpop.permute.xlu1 %377  ;;  %v349_v59 = vmul.f32 %v348_v27, %v341_v32  ;;  %v355_v37 = vadd.f32 %v351_v33, %v346_v29  ;;  %v350_v30 = vmul.f32 %v348_v27, %v340_v60  ;;  %v345_v24 = vmul.f32 %v957_v23, %v328_v44 }
  0xea   :  { %v372_v51 = vpop.permute.xlu0 %371  ;;  %v353_v27 = vadd.f32 %v349_v59, %v344_v3  ;;  %v367_v25 = vadd.f32 %v355_v37, %v314_v21  ;;  %v1099_v3 = vld [vmem:[#allocation12_spill] sm:$0xff] }
  0xeb   :  { %v383_v46 = vsel %vm379_vm10, %v378_v61, %v372_v51 }
  0xec   :  { %v391_v53 = vpop.permute.xlu1 %390  ;;  %v400_v20 = vmul.f32 %v968_v62, %v383_v46  ;;  %v365_v46 = vadd.f32 %v353_v27, %v312_v57 }
  0xee   :  { %v385_v42 = vpop.permute.xlu0 %384 }
  0xef   :  { %v395_v4 = vsel %vm379_vm10, %v391_v53, %v385_v42 }
  0xf0   :  { %v405_v10 = vmul.f32 %v987_v34, %v395_v4  ;;  %v376_v22 = vpop.permute.xlu1 %375 }
  0xf1   :  { %v380_v7 = vsel %vm379_vm10, %v376_v22, %v378_v61  ;;  %v354_v61 = vadd.f32 %v350_v30, %v345_v24 }
  0xf2   :  { %v409_v39 = vadd.f32 %v405_v10, %v400_v20  ;;  %v374_v12 = vpop.permute.xlu0 %373  ;;  %v399_v63 = vmul.f32 %v968_v62, %v380_v7  ;;  %v1100_v7 = vld [vmem:[#allocation13_spill] sm:$0xff] }
  0xf3   :  { %v382_v58 = vsel %vm379_vm10, %v372_v51, %v374_v12  ;;  %v381_v35 = vsel %vm379_vm10, %v374_v12, %v376_v22  ;;  %v366_v28 = vadd.f32 %v354_v61, %v313_v18  ;;  %v1101_v18 = vld [vmem:[#allocation14_spill] sm:$0xff] }
  0xf4   :  { %v417_v52 = vsel %vm413_vm11, %v409_v39, 0.0  ;;  %v389_v54 = vpop.permute.xlu1 %388  ;;  %v397_v8 = vmul.f32 %v968_v62, %v382_v58  ;;  %v398_v11 = vmul.f32 %v968_v62, %v381_v35 }
  0xf5   :  { %v421_v48 = vadd.f32 %v417_v52, %v368_v55  ;;  %v392_v36 = vsel %vm379_vm10, %v389_v54, %v391_v53  ;;  %v1098_v55 = vld [vmem:[#allocation11_spill] sm:$0xff] }
  0xf6   :  { %v404_v23 = vmul.f32 %v987_v34, %v392_v36  ;;  %v387_v14 = vpop.permute.xlu0 %386  ;;  %v1102_v52 = vld [vmem:[#allocation15_spill] sm:$0xff] }
  0xf7   :  { %v522_v40 = vmul.f32 -1.442695, %v421_v48  ;;  %v393_v51 = vsel %vm379_vm10, %v387_v14, %v389_v54  ;;  %v394_v41 = vsel %vm379_vm10, %v385_v42, %v387_v14 }
  0xf8   :  { %v408_v56 = vadd.f32 %v404_v23, %v399_v63  ;;  %v402_v53 = vmul.f32 %v987_v34, %v394_v41  ;;  %v403_v47 = vmul.f32 %v987_v34, %v393_v51 }
  0xf9   :  { %532 = vpow2.f32 %v522_v40 }
  0xfa   :  { %v420_v50 = vadd.f32 %v408_v56, %v367_v25  ;;  %v406_v33 = vadd.f32 %v402_v53, %v397_v8  ;;  %v407_v32 = vadd.f32 %v403_v47, %v398_v11 }
  0xfc   :  { %v521_v43 = vmul.f32 -1.442695, %v420_v50  ;;  %v418_v29 = vadd.f32 %v406_v33, %v365_v46  ;;  %v419_v60 = vadd.f32 %v407_v32, %v366_v28 }
  0xfe   :  { %534 = vpow2.f32 %v521_v43  ;;  %v519_v4 = vmul.f32 -1.442695, %v418_v29  ;;  %v520_v45 = vmul.f32 -1.442695, %v419_v60 }
 0x100   :  { %536 = vpow2.f32 %v519_v4 }
 0x101   :  { %538 = vpow2.f32 %v520_v45 }
 0x103   :  { %v533_v62 = vpop.eup %532 }
 0x104   :  { %v437_v42 = vadd.f32 1.0, %v533_v62 }
 0x106   :  { %540 = vrcp.f32 %v437_v42 }
 0x108   :  { %v535_v38 = vpop.eup %534 }
 0x109   :  { %v436_v19 = vadd.f32 1.0, %v535_v38 }
 0x10a   :  { %v537_v34 = vpop.eup %536 }
 0x10b   :  { %v539_v20 = vpop.eup %538  ;;  %542 = vrcp.f32 %v436_v19  ;;  %v434_v10 = vadd.f32 1.0, %v537_v34 }
 0x10c   :  { %v435_v22 = vadd.f32 1.0, %v539_v20 }
 0x10d   :  { %544 = vrcp.f32 %v434_v10 }
 0x10e   :  { %546 = vrcp.f32 %v435_v22 }
 0x110   :  { %v541_v15 = vpop.eup %540 }
 0x111   :  { %v449_v49 = vmul.f32 %v541_v15, %v666_v5  ;;  %v461_v44 = vmul.f32 %v541_v15, %v668_v6  ;;  %v473_v59 = vmul.f32 %v541_v15, %v674_v9  ;;  %v485_v21 = vmul.f32 %v541_v15, %v680_v13 }
 0x113   :  { %453 = vst [vmem:[#allocation7 + $0x18] sm:$0xff] %v449_v49  ;;  %465 = vst [vmem:[#allocation7 + $0x38] sm:$0xff] %v461_v44 }
 0x114   :  { %477 = vst [vmem:[#allocation7 + $0x58] sm:$0xff] %v473_v59  ;;  %489 = vst [vmem:[#allocation7 + $0x78] sm:$0xff] %v485_v21 }
 0x115   :  { %v543_v37 = vpop.eup %542 }
 0x116   :  { %v448_v30 = vmul.f32 %v543_v37, %v684_v16  ;;  %v460_v39 = vmul.f32 %v543_v37, %v686_v17  ;;  %v472_v12 = vmul.f32 %v543_v37, %v706_v26  ;;  %v484_v57 = vmul.f32 %v543_v37, %v719_v31 }
 0x117   :  { %v545_v5 = vpop.eup %544 }
 0x118   :  { %v547_v6 = vpop.eup %546  ;;  %452 = vst [vmem:[#allocation7 + $0x10] sm:$0xff] %v448_v30  ;;  %464 = vst [vmem:[#allocation7 + $0x30] sm:$0xff] %v460_v39  ;;  %v446_v9 = vmul.f32 %v545_v5, %v656_v0  ;;  %v458_v13 = vmul.f32 %v545_v5, %v658_v1  ;;  %v470_v16 = vmul.f32 %v545_v5, %v660_v2 }
 0x119   :  { %476 = vst [vmem:[#allocation7 + $0x50] sm:$0xff] %v472_v12  ;;  %488 = vst [vmem:[#allocation7 + $0x70] sm:$0xff] %v484_v57  ;;  %v482_v17 = vmul.f32 %v545_v5, %v1098_v55  ;;  %v447_v26 = vmul.f32 %v547_v6, %v1099_v3  ;;  %v459_v31 = vmul.f32 %v547_v6, %v1100_v7 }
 0x11a   :  { %v471_v24 = vmul.f32 %v547_v6, %v1101_v18  ;;  %v483_v58 = vmul.f32 %v547_v6, %v1102_v52  ;;  %450 = vst [vmem:[#allocation7] sm:$0xff] %v446_v9  ;;  %462 = vst [vmem:[#allocation7 + $0x20] sm:$0xff] %v458_v13 }
 0x11b   :  { %474 = vst [vmem:[#allocation7 + $0x40] sm:$0xff] %v470_v16  ;;  %486 = vst [vmem:[#allocation7 + $0x60] sm:$0xff] %v482_v17 }
 0x11c   :  { %451 = vst [vmem:[#allocation7 + $0x8] sm:$0xff] %v447_v26  ;;  %463 = vst [vmem:[#allocation7 + $0x28] sm:$0xff] %v459_v31 }
 0x11d   :  { %475 = vst [vmem:[#allocation7 + $0x48] sm:$0xff] %v471_v24  ;;  %487 = vst [vmem:[#allocation7 + $0x68] sm:$0xff] %v483_v58 }
 0x11e   :  { %591 = shalt.err (!%p588_p1)
}
 0x11f   :  { %s592_s26 = scalar_lea.hbm %s1087_s2, 2048 }
 0x120   :  { %p593_p2 = scmp.ne.s32.totalorder %s1087_s2, %s592_s26  ;;  %p596_p3 = scmp.lt.u32.totalorder %s592_s26, %s1087_s2 }
 0x122   :  { %p598_p4 = pnand %p596_p3, %p593_p2 }
 0x124   :  { %601 = shalt.err (!%p598_p4)
}
 0x125   :  { %499 = dma.vmem_to_hbm [thread:$0]  %s497_s22, 2048, %s1087_s2, [#allocation4]  }
 0x126   :  { %606 = dma.done.wait [#allocation4], 2048  }
 0x127   :  { %607 = vsyncadd [#allocation4], 4294965248 }
 0x128   :  { %503 = vsyncpa [#allocation3], 1 }
 0x129   :  { %504 = vsyncpa [#allocation4], 1 }
 0x12a   :  { %505 = vsyncpa [#allocation5], 1 }

</bundles_post_ra>
